<compile_context>
chip_gen: v5e
topology: v5e:2x2
jax: 0.10.0
libtpu: 0.0.40
codegen_flags: <defaults>
</compile_context>

<pallas_src>
import math

import jax
import jax.numpy as jnp
from jax.experimental import pallas as pl
from jax.experimental.pallas import tpu as pltpu

_LANE = 128
_LANE_TILE_CAP = 32 * 1024          # lanes; keeps the resident PE tile small
_DEFAULT_BLOCK_BYTES = 8 << 20      # ~8 MiB/step: v7x sweet spot, fine on v5e/v6e
_DEFAULT_VMEM_LIMIT = 40 << 20      # 4x tile double-buffering exceeds 32 MiB default
_DEFAULT_MIN_STEPS = 8


def _round_up(n, m):
    return ((n + m - 1) // m) * m


def _sublane(itemsize):
    # Sub-32-bit dtypes pack along sublanes: 8 rows f32, 16 bf16, 32 i8/fp8.
    return {4: 8, 2: 16, 1: 32}.get(itemsize, 8)


def _choose_tiles(B, L, itemsize, target_block_bytes, min_steps):
    """(bt, lb) batch/lane tile sizes for a cdiv grid over a (B, L) array."""
    sub = _sublane(itemsize)

    # Whole array fits one target-sized block (both dims full-extent = legal).
    if B * _round_up(L, _LANE) * itemsize <= target_block_bytes:
        return B, L

    bt_full = B if B <= sub else _round_up(B, sub)
    lb_full = L if L <= _LANE else _round_up(L, _LANE)
    min_bt = B if B <= sub else sub

    # Lane tile: large enough to amortize per-step overhead even at the minimum
    # batch tile, capped so the resident PE tile stays small; always 128-dense.
    lb_budget = (target_block_bytes // max(min_bt * itemsize, 1)) // _LANE * _LANE
    lb = min(lb_full, _LANE_TILE_CAP, max(_LANE, lb_budget))

    # Batch tile: fill the remaining per-step byte budget (multiple of sublane).
    bt_budget = (target_block_bytes // max(lb * itemsize, 1)) // sub * sub
    bt = min(bt_full, max(min_bt, bt_budget))

    # Guarantee a multi-step grid so the auto double-buffer pipeline overlaps
    # DMA with compute and v7x's two TensorCores both get work.  Shrink the
    # batch tile first (cheap parallelism), then the lane tile.
    def steps(bt_, lb_):
        return pl.cdiv(B, bt_) * pl.cdiv(L, lb_)

    while steps(bt, lb) < min_steps and bt > min_bt:
        bt = max(min_bt, (bt // 2) // sub * sub)
    while steps(bt, lb) < min_steps and lb > _LANE:
        lb = max(_LANE, (lb // 2) // _LANE * _LANE)

    return bt, lb


def make_positional_encoding(d_model, max_seq_len=5000, dtype=jnp.float32):
    """Flattened PE table matching the torch buffer: shape (1, max_seq_len*d_model).

    Built once (like register_buffer) in the activation dtype so the kernel
    call does no per-call slice/cast HBM pass.
    """
    position = jnp.arange(max_seq_len, dtype=jnp.float32)[:, None]
    div_term = jnp.exp(jnp.arange(0, d_model, 2, dtype=jnp.float32)
                       * (-math.log(10000.0) / d_model))
    angles = position * div_term                                # (S_max, ceil(D/2))
    pe = jnp.zeros((max_seq_len, d_model), jnp.float32)
    pe = pe.at[:, 0::2].set(jnp.sin(angles))
    pe = pe.at[:, 1::2].set(jnp.cos(angles)[:, : d_model // 2])  # odd-D safe
    return pe.reshape(1, max_seq_len * d_model).astype(dtype)


def _pe_add_kernel(x_ref, pe_ref, o_ref):
    # (bt, lb) + (1, lb): sublane-broadcast add on the VPU, lane-dense store.
    o_ref[...] = x_ref[...] + pe_ref[...]


def positional_encoding(x, pe_table, *,
                        target_block_bytes=_DEFAULT_BLOCK_BYTES,
                        vmem_limit_bytes=_DEFAULT_VMEM_LIMIT,
                        min_steps=_DEFAULT_MIN_STEPS,
                        donate_x=False):
    """x: (B, S, D); pe_table: (1, S_max*D) (or (1, S_max, D)).

    Returns x + pe[:, :S, :] (dropout in eval mode = identity).
    """
    B, S, D = x.shape
    L = S * D

    if pe_table.ndim == 3:                       # accept (1, S_max, D) too
        pe_table = pe_table.reshape(1, -1)
    if pe_table.shape[-1] < L:
        raise ValueError(
            f"PE table has {pe_table.shape[-1]} entries, need S*D = {L}")
    if pe_table.dtype != x.dtype:
        # Prefer building the table in the activation dtype up front.
        pe_table = pe_table.astype(x.dtype)

    # Flatten (S, D) -> L: lane-dense last dim even when D < 128; reshape of a
    # contiguous array is free (no extra HBM pass).
    x2 = x.reshape(B, L)

    itemsize = jnp.dtype(x.dtype).itemsize
    bt, lb = _choose_tiles(B, L, itemsize, target_block_bytes, min_steps)

    # Lane axis outer / batch axis inner: the (1, lb) PE block index is
    # constant across the inner axis, so the pipeline keeps it resident
    # (one PE fetch per lane block, not per grid step).
    grid = (pl.cdiv(L, lb), pl.cdiv(B, bt))

    call_kwargs = {}
    if donate_x:
        # Alias x to the output (caller must donate x) -> no separate output
        # HBM allocation / defensive copy.  Bytes moved are unchanged.
        call_kwargs["input_output_aliases"] = {0: 0}

    out2 = pl.pallas_call(
        _pe_add_kernel,
        out_shape=jax.ShapeDtypeStruct((B, L), x.dtype),
        grid_spec=pltpu.PrefetchScalarGridSpec(
            num_scalar_prefetch=0,
            grid=grid,
            in_specs=[
                pl.BlockSpec((bt, lb), lambda l, b: (b, l)),
                pl.BlockSpec((1, lb), lambda l, b: (0, l)),
            ],
            out_specs=pl.BlockSpec((bt, lb), lambda l, b: (b, l)),
        ),
        compiler_params=pltpu.CompilerParams(
            dimension_semantics=("parallel", "parallel"),
            vmem_limit_bytes=vmem_limit_bytes),
        **call_kwargs,
    )(x2, pe_table)

    # TODO(synk): training-mode dropout (p=0.1) would need pltpu.prng_seed +
    # pltpu.stateful_bernoulli and 1/(1-p) scaling inside the kernel; this is
    # the deterministic eval-mode forward.
    return out2.reshape(B, S, D)


def _pe_reference(x, pe_table):
    """Pure-JAX reference matching the PyTorch forward (eval mode)."""
    B, S, D = x.shape
    if pe_table.ndim == 3:
        pe_table = pe_table.reshape(1, -1)
    pe = pe_table[:, :S * D].reshape(1, S, D).astype(x.dtype)
    return x + pe


if __name__ == "__main__":
    key = jax.random.PRNGKey(0)
    k1, k2, k3 = jax.random.split(key, 3)

    # Case 1: small f32 shape, default params (single full-extent block).
    D1, S1 = 32, 8
    pe1 = make_positional_encoding(D1, max_seq_len=5000)
    x1 = jax.random.normal(k1, (2, S1, D1), dtype=jnp.float32)
    o1 = jax.block_until_ready(positional_encoding(x1, pe1))
    assert o1.shape == x1.shape
    assert jnp.allclose(o1, _pe_reference(x1, pe1), atol=1e-6, rtol=1e-6), \
        "mismatch vs reference (case 1)"

    # Case 2: f32, tiny byte target forces a multi-step cdiv grid
    # (exercises lane-tiled index maps + resident PE tile across batch).
    D2, S2 = 32, 16
    pe2 = make_positional_encoding(D2, max_seq_len=64)
    x2 = jax.random.normal(k2, (4, S2, D2), dtype=jnp.float32)
    o2 = jax.block_until_ready(
        positional_encoding(x2, pe2, target_block_bytes=4096))
    assert o2.shape == x2.shape
    assert jnp.allclose(o2, _pe_reference(x2, pe2), atol=1e-6, rtol=1e-6), \
        "mismatch vs reference (case 2)"

    # Case 3: bf16, L not a multiple of 128 (partial trailing lane block) and a
    # batch that is not a sublane multiple -> exercises cdiv ragged handling
    # and the dtype-aware sublane granularity.
    D3, S3 = 24, 10
    pe3 = make_positional_encoding(D3, max_seq_len=64, dtype=jnp.bfloat16)
    x3 = jax.random.normal(k3, (3, S3, D3), dtype=jnp.bfloat16)
    o3 = jax.block_until_ready(
        positional_encoding(x3, pe3, target_block_bytes=1024))
    assert o3.shape == x3.shape
    assert jnp.allclose(o3.astype(jnp.float32),
                        _pe_reference(x3, pe3).astype(jnp.float32),
                        atol=2e-2, rtol=2e-2), "mismatch vs reference (case 3)"

    print("KERNEL_OK")
</pallas_src>

<mosaic_0001>
module attributes {stable_mosaic.version = 11 : i64} {
  func.func @_pe_add_kernel(%arg0: i32, %arg1: i32, %arg2: memref<2x256xf32, #tpu.memory_space<vmem>>, %arg3: memref<1x256xf32, #tpu.memory_space<vmem>>, %arg4: memref<2x256xf32, #tpu.memory_space<vmem>>) attributes {dimension_semantics = [#tpu.dimension_semantics<parallel>, #tpu.dimension_semantics<parallel>], iteration_bounds = array<i64: 1, 1>, scalar_prefetch = 0 : i64, scratch_operands = 0 : i64, tpu.core_type = #tpu.core_type<tc>, window_params = [{transform_indices = @transform_0, window_bounds = array<i64: 2, 256>}, {transform_indices = @transform_1, window_bounds = array<i64: 1, 256>}, {transform_indices = @transform_2, window_bounds = array<i64: 2, 256>}]} {
    %c0 = arith.constant 0 : index
    %c0_0 = arith.constant 0 : index
    %0 = vector.load %arg2[%c0, %c0_0] : memref<2x256xf32, #tpu.memory_space<vmem>>, vector<2x256xf32>
    %c0_1 = arith.constant 0 : index
    %c0_2 = arith.constant 0 : index
    %1 = vector.load %arg3[%c0_1, %c0_2] : memref<1x256xf32, #tpu.memory_space<vmem>>, vector<1x256xf32>
    %2 = vector.broadcast %1 : vector<1x256xf32> to vector<2x256xf32>
    %3 = arith.addf %0, %2 : vector<2x256xf32>
    %c0_3 = arith.constant 0 : index
    %c0_4 = arith.constant 0 : index
    %4 = vector.load %arg4[%c0_3, %c0_4] : memref<2x256xf32, #tpu.memory_space<vmem>>, vector<2x256xf32>
    tpu.vector_store %arg4[%c0_3, %c0_4], %3 {strides = array<i32>} : memref<2x256xf32, #tpu.memory_space<vmem>>, vector<2x256xf32>,
    return
  }
  func.func @transform_0(%arg0: i32, %arg1: i32) -> (i32, i32) {
    %c0_i32 = arith.constant 0 : i32
    return %arg1, %arg0 : i32, i32
  }
  func.func @transform_1(%arg0: i32, %arg1: i32) -> (i32, i32) {
    %c0_i32 = arith.constant 0 : i32
    %c0_i32_0 = arith.constant 0 : i32
    return %c0_i32, %arg0 : i32, i32
  }
  func.func @transform_2(%arg0: i32, %arg1: i32) -> (i32, i32) {
    %c0_i32 = arith.constant 0 : i32
    return %arg1, %arg0 : i32, i32
  }
}

</mosaic_0001>

<bundles_post_ra>
// kernel: tpu_custom_call.1
= control target key start
LH: loop header
LB: loop body
LE: loop exit
PB: predicated region body
PF: predicated region fallthrough
CT: control target
= control target key end

     0   :  { %7 = vsyncpa [#allocation3], 0  ;;  %s177_s0 = inlined_call_operand.hbm [shape: f32[2,256], index: 0, kind: input, shape index: {}]   ;;  %s178_s1 = inlined_call_operand.hbm [shape: f32[1,160000], index: 1, kind: input, shape index: {}]   ;;  %s179_s2 = inlined_call_operand.hbm [shape: f32[2,256], index: 2, kind: output, shape index: {}]  }
   0x1   :  { %8 = vsyncpa [#allocation6], 0 }
   0x2   :  { %9 = vsyncpa [#allocation4], 0  ;;  %s15_s11 = sshll.u32 %s177_s0, 4  ;;  %s150_s12 = smov [#allocation2]   ;;  %s16_s11 = int_to_ptr.hbm [resolvable:$true] %s15_s11 }
   0x3   :  { %s17_s13 = sshll.u32 %s150_s12, 4  ;;  %s26_s16 = sshll.u32 %s178_s1, 4  ;;  %s18_s13 = int_to_ptr.vmem [resolvable:$true] %s17_s13  ;;  %s27_s16 = int_to_ptr.hbm [resolvable:$true] %s26_s16 }
   0x4   :  { %20 = dma.hbm_to_vmem [thread:$0]  %s16_s11, 64, %s18_s13, [#allocation3]  }
   0x5   :  { %s151_s17 = smov [#allocation5]  }
   0x6   :  { %s28_s18 = sshll.u32 %s151_s17, 4  ;;  %s29_s18 = int_to_ptr.vmem [resolvable:$true] %s28_s18 }
   0x7   :  { %31 = dma.hbm_to_vmem [thread:$0]  %s27_s16, 32, %s29_s18, [#allocation6]  }
   0x8   :  { %144 = dma.done.wait [#allocation3], 64  }
   0x9   :  { %145 = vsyncadd [#allocation3], 4294967232 }
   0xa   :  { %146 = dma.done.wait [#allocation6], 32  }
   0xb   :  { %147 = vsyncadd [#allocation6], 4294967264  ;;  %v41_v0 = vld [vmem:[#allocation5] sm:$0x3]  ;;  %vm46_vm0 = vcmask 1041408   ;;  %s152_s0 = smov [#allocation7]  }
   0xc   :  { %v43_v1 = vperm.slane %v41_v0, 0  ;;  %v44_v2 = vperm.slane %v41_v0, 1  ;;  %v40_v3 = vld [vmem:[#allocation2] sm:$0xf]  ;;  %s56_s19 = sshll.u32 %s152_s0, 4  ;;  %s58_s21 = sshll.u32 %s179_s2, 4  ;;  %s57_s19 = int_to_ptr.vmem [resolvable:$true] %s56_s19  ;;  %s59_s21 = int_to_ptr.hbm [resolvable:$true] %s58_s21 }
   0xe   :  { %v45_v4 = vrot.slane %v44_v2, 6 }
  0x10   :  { %v47_v5 = vsel %vm46_vm0, %v43_v1, %v45_v4 }
  0x11   :  { %v49_v6 = vadd.f32 %v47_v5, %v40_v3 }
  0x13   :  { %50 = vst [vmem:[#allocation7] sm:$0xf] %v49_v6 }
  0x14   :  { %61 = dma.vmem_to_hbm [thread:$0]  %s57_s19, 64, %s59_s21, [#allocation4]  }
  0x15   :  { %148 = dma.done.wait [#allocation4], 64  }
  0x16   :  { %149 = vsyncadd [#allocation4], 4294967232 }
  0x17   :  { %66 = vsyncpa [#allocation3], 1 }
  0x18   :  { %67 = vsyncpa [#allocation6], 1 }
  0x19   :  { %68 = vsyncpa [#allocation4], 1 }

</bundles_post_ra>
